<compile_context>
chip_gen: v5e
topology: v5e:2x2
jax: 0.10.0
libtpu: 0.0.40
codegen_flags: <defaults>
</compile_context>

<pallas_src>
import math
import functools

import jax
import jax.numpy as jnp
from jax import lax
from jax.experimental import pallas as pl
from jax.experimental.pallas import tpu as pltpu


def _round_up(x, m):
    return ((x + m - 1) // m) * m


def _pick_row_tile(hw, target=512):
    for t in (target, 512, 256, 128, 64, 32, 16, 8):
        if t <= hw and hw % t == 0:
            return t
    return hw


# ----------------------------------------------------------------------------
# Kernel 1: synthetic backbone
#   per grid step (b, r):  hidden = ReLU(patches_tile @ w_stem)   (MXU, bf16)
#                          acc   += sum_rows(hidden)              (GAP reduce)
#   last r:                emb[b] = (acc / HW) @ w_cls + b_cls
# ----------------------------------------------------------------------------
def backbone_kernel(patches_ref, w_stem_ref, w_cls_ref, b_cls_ref, emb_ref,
                    acc_ref, *, inv_hw):
    r = pl.program_id(1)

    @pl.when(r == 0)
    def _init():
        acc_ref[...] = jnp.zeros_like(acc_ref)

    # (row_tile, Kp) bf16 @ (Kp, F) bf16 -> fp32 accumulation on the MXU.
    hidden = jnp.dot(patches_ref[...], w_stem_ref[...],
                     preferred_element_type=jnp.float32)
    hidden = jnp.maximum(hidden, 0.0)

    # Global-average-pool as an in-kernel reduction (no pool matrix).
    acc_ref[...] += jnp.sum(hidden, axis=0, keepdims=True)        # (1, F)

    @pl.when(r == pl.num_programs(1) - 1)
    def _finalize():
        pooled = acc_ref[...] * inv_hw                            # (1, F)
        emb = jnp.dot(pooled, w_cls_ref[...],
                      preferred_element_type=jnp.float32) + b_cls_ref[...]
        emb_ref[...] = emb                                        # (1, E) lane-dense


# ----------------------------------------------------------------------------
# Kernel 2: ArcMarginProduct (class-tiled)
#   cosine = normalize(emb) @ wn_tile.T ; margin blend ; * s
#   wn is pre-normalized outside the kernel; label arrives as (B, 1) int32.
# ----------------------------------------------------------------------------
def arc_kernel(emb_ref, wn_ref, lbl_ref, out_ref, *,
               s, cos_m, sin_m, th, mm, ls_eps, n_classes, tile_c):
    x = emb_ref[...]                                              # (B, E) fp32
    ss = jnp.sum(x * x, axis=-1, keepdims=True)
    # F.normalize(x): x / max(||x||, 1e-12)  ==  x * rsqrt(max(||x||^2, 1e-24))
    xn = x * lax.rsqrt(jnp.maximum(ss, 1e-24))                    # EUP rsqrt

    # cosine = xn @ wn.T without materializing a transpose of the weight tile.
    cosine = lax.dot_general(
        xn.astype(jnp.bfloat16), wn_ref[...],
        dimension_numbers=(((1,), (1,)), ((), ())),
        preferred_element_type=jnp.float32)                       # (B, tile_c)

    # Clamp before sqrt: |cosine| can exceed 1 by float error.
    sine = jnp.sqrt(jnp.maximum(1.0 - cosine * cosine, 0.0))
    phi = cosine * cos_m - sine * sin_m
    phi = jnp.where(cosine > th, phi, cosine - mm)                # easy_margin=False

    # one_hot via global class index compare (label indices, not dense one-hot).
    c0 = pl.program_id(0) * tile_c
    col = c0 + lax.broadcasted_iota(jnp.int32, cosine.shape, 1)
    one_hot = (col == lbl_ref[...]).astype(jnp.float32)           # lbl: (B, 1) i32
    if ls_eps > 0.0:
        one_hot = (1.0 - ls_eps) * one_hot + ls_eps / n_classes

    out_ref[...] = (one_hot * phi + (1.0 - one_hot) * cosine) * s


# ----------------------------------------------------------------------------
# pallas_call wrappers
# ----------------------------------------------------------------------------
def backbone_forward(patches, w_stem, w_cls, b_cls, *, row_tile):
    B, HW, Kp = patches.shape
    F = w_stem.shape[1]
    E = w_cls.shape[1]
    assert HW % row_tile == 0
    R = HW // row_tile

    kern = functools.partial(backbone_kernel, inv_hw=1.0 / HW)
    flops = 2 * B * HW * Kp * F + 2 * B * F * E
    bytes_accessed = (patches.size * 2 + w_stem.size * 2
                      + (w_cls.size + b_cls.size + B * E) * 4)

    grid_spec = pltpu.PrefetchScalarGridSpec(
        num_scalar_prefetch=0,
        grid=(B, R),
        in_specs=[
            pl.BlockSpec((None, row_tile, Kp), lambda b, r: (b, r, 0)),
            pl.BlockSpec((Kp, F), lambda b, r: (0, 0)),
            pl.BlockSpec((F, E), lambda b, r: (0, 0)),
            pl.BlockSpec((1, E), lambda b, r: (0, 0)),
        ],
        out_specs=pl.BlockSpec((None, 1, E), lambda b, r: (b, 0, 0)),
        scratch_shapes=[pltpu.VMEM((1, F), jnp.float32)],
    )
    emb = pl.pallas_call(
        kern,
        out_shape=jax.ShapeDtypeStruct((B, 1, E), jnp.float32),
        grid_spec=grid_spec,
        compiler_params=pltpu.CompilerParams(
            dimension_semantics=("parallel", "arbitrary"),
            vmem_limit_bytes=32 * 1024 * 1024),
        cost_estimate=pl.CostEstimate(flops=flops, transcendentals=0,
                                      bytes_accessed=bytes_accessed),
    )(patches, w_stem, w_cls, b_cls)
    return emb.reshape(B, E)


def arc_forward(emb, wn, label_idx, *, s, m, ls_eps, n_classes, tile_c):
    B, E = emb.shape
    C_pad = wn.shape[0]
    assert C_pad % tile_c == 0
    G = C_pad // tile_c

    kern = functools.partial(
        arc_kernel,
        s=float(s), cos_m=math.cos(m), sin_m=math.sin(m),
        th=math.cos(math.pi - m), mm=math.sin(math.pi - m) * m,
        ls_eps=float(ls_eps), n_classes=n_classes, tile_c=tile_c)

    flops = 2 * B * C_pad * E + 8 * B * C_pad
    bytes_accessed = (emb.size + B * C_pad + label_idx.size) * 4 + wn.size * 2

    grid_spec = pltpu.PrefetchScalarGridSpec(
        num_scalar_prefetch=0,
        grid=(G,),
        in_specs=[
            pl.BlockSpec((B, E), lambda c: (0, 0)),
            pl.BlockSpec((tile_c, E), lambda c: (c, 0)),
            pl.BlockSpec((B, 1), lambda c: (0, 0)),
        ],
        out_specs=pl.BlockSpec((B, tile_c), lambda c: (0, c)),
    )
    return pl.pallas_call(
        kern,
        out_shape=jax.ShapeDtypeStruct((B, C_pad), jnp.float32),
        grid_spec=grid_spec,
        compiler_params=pltpu.CompilerParams(
            dimension_semantics=("parallel",),
            vmem_limit_bytes=32 * 1024 * 1024),
        cost_estimate=pl.CostEstimate(flops=flops, transcendentals=B * C_pad,
                                      bytes_accessed=bytes_accessed),
    )(emb, wn, label_idx)


# ----------------------------------------------------------------------------
# JAX glue: im2col + padding to lane-dense shapes
# ----------------------------------------------------------------------------
def im2col_3x3(x):
    """x: (B, C, H, W) NCHW -> (B, H*W, C*9) patches for a 3x3, pad=1 conv."""
    B, C, H, W = x.shape
    xp = jnp.pad(x, ((0, 0), (0, 0), (1, 1), (1, 1)))
    cols = []
    for kh in range(3):
        for kw in range(3):
            cols.append(xp[:, :, kh:kh + H, kw:kw + W])
    patches = jnp.stack(cols, axis=2)                     # (B, C, 9, H, W)
    patches = patches.transpose(0, 3, 4, 1, 2).reshape(B, H * W, C * 9)
    return patches


def happy_whale_forward(image, label, params, *, s=30.0, m=0.3, ls_eps=0.0,
                        row_tile=None, tile_c=None):
    """image: (B, C, H, W) float32 NCHW; label: (B, n_classes) (one-hot-ish)."""
    B, C, H, W = image.shape
    HW = H * W
    w_stem = params["w_stem"]        # (C*9, F)
    w_cls = params["w_cls"]          # (F, E)
    b_cls = params["b_cls"]          # (1, E)
    w_arc = params["w_arc"]          # (n_classes, E)
    K0, F0 = w_stem.shape
    E0 = w_cls.shape[1]
    C0 = w_arc.shape[0]

    Kp = _round_up(K0, 128)
    Fp = _round_up(F0, 128)
    Ep = _round_up(E0, 128)
    if tile_c is None:
        tile_c = min(1024, _round_up(C0, 128))
    Cp = _round_up(C0, tile_c)
    if row_tile is None:
        row_tile = _pick_row_tile(HW)

    # im2col for the 3x3/pad=1 stem conv, padded lane-dense and cast to bf16.
    patches = im2col_3x3(image)
    patches = jnp.pad(patches, ((0, 0), (0, 0), (0, Kp - K0))).astype(jnp.bfloat16)

    w_stem_p = jnp.pad(w_stem, ((0, Kp - K0), (0, Fp - F0))).astype(jnp.bfloat16)
    w_cls_p = jnp.pad(w_cls, ((0, Fp - F0), (0, Ep - E0))).astype(jnp.float32)
    b_cls_p = jnp.pad(b_cls, ((0, 0), (0, Ep - E0))).astype(jnp.float32)

    emb_p = backbone_forward(patches, w_stem_p, w_cls_p, b_cls_p,
                             row_tile=row_tile)                    # (B, Ep)
    emb = emb_p[:, :E0]

    # Pre-normalize the (batch-constant) ArcFace weight once, outside the kernel.
    wn = w_arc / jnp.maximum(
        jnp.sqrt(jnp.sum(w_arc * w_arc, axis=-1, keepdims=True)), 1e-12)
    wn_p = jnp.pad(wn, ((0, Cp - C0), (0, Ep - E0))).astype(jnp.bfloat16)

    # torch: label.argmax(dim=-1)  (first max index on ties) -> (B, 1) int32.
    label_idx = jnp.argmax(label, axis=-1).astype(jnp.int32).reshape(B, 1)

    out_p = arc_forward(emb_p, wn_p, label_idx, s=s, m=m, ls_eps=ls_eps,
                        n_classes=C0, tile_c=tile_c)               # (B, Cp)
    out = out_p[:, :C0]
    return out, emb


# ----------------------------------------------------------------------------
# Pure-JAX reference (mirrors the kernel's bf16/fp32 precision choices)
# ----------------------------------------------------------------------------
def reference_forward(image, label, params, *, s=30.0, m=0.3, ls_eps=0.0):
    B, C, H, W = image.shape
    patches = im2col_3x3(image)                                    # (B, HW, C*9)
    hidden = jnp.maximum(
        jnp.einsum("bpk,kf->bpf", patches.astype(jnp.bfloat16),
                   params["w_stem"].astype(jnp.bfloat16),
                   preferred_element_type=jnp.float32), 0.0)
    pooled = hidden.mean(axis=1)
    emb = pooled @ params["w_cls"] + params["b_cls"]
    xn = emb / jnp.maximum(jnp.linalg.norm(emb, axis=-1, keepdims=True), 1e-12)
    w = params["w_arc"]
    wn = w / jnp.maximum(jnp.linalg.norm(w, axis=-1, keepdims=True), 1e-12)
    cosine = jnp.dot(xn.astype(jnp.bfloat16), wn.astype(jnp.bfloat16).T,
                     preferred_element_type=jnp.float32)
    sine = jnp.sqrt(jnp.maximum(1.0 - cosine ** 2, 0.0))
    phi = cosine * math.cos(m) - sine * math.sin(m)
    phi = jnp.where(cosine > math.cos(math.pi - m), phi,
                    cosine - math.sin(math.pi - m) * m)
    one_hot = jax.nn.one_hot(jnp.argmax(label, axis=-1), w.shape[0],
                             dtype=jnp.float32)
    if ls_eps > 0:
        one_hot = (1 - ls_eps) * one_hot + ls_eps / w.shape[0]
    out = (one_hot * phi + (1.0 - one_hot) * cosine) * s
    return out, emb


if __name__ == "__main__":
    # Small, forward-consistent shapes (exercise K/F/E/C padding + both grids).
    B, C, H, W = 2, 4, 16, 16
    F_CH = 96           # synthetic backbone feature channels
    EMB = 96            # emb_size
    N_CLASSES = 200     # n_classes

    key = jax.random.PRNGKey(0)
    k_img, k_stem, k_cls, k_b, k_arc, k_lab = jax.random.split(key, 6)

    image = jax.random.normal(k_img, (B, C, H, W), jnp.float32)
    label_idx = jax.random.randint(k_lab, (B,), 0, N_CLASSES)
    label = jax.nn.one_hot(label_idx, N_CLASSES, dtype=jnp.float32)

    w_stem = 0.05 * jax.random.normal(k_stem, (C * 9, F_CH), jnp.float32)
    w_cls = 0.05 * jax.random.normal(k_cls, (F_CH, EMB), jnp.float32)
    b_cls = 0.01 * jax.random.normal(k_b, (1, EMB), jnp.float32)
    xav_bound = math.sqrt(6.0 / (EMB + N_CLASSES))
    w_arc = jax.random.uniform(k_arc, (N_CLASSES, EMB), jnp.float32,
                               minval=-xav_bound, maxval=xav_bound)
    params = {"w_stem": w_stem, "w_cls": w_cls, "b_cls": b_cls, "w_arc": w_arc}

    out, emb = happy_whale_forward(image, label, params, s=30.0, m=0.3,
                                   ls_eps=0.0, row_tile=128, tile_c=128)
    out, emb = jax.block_until_ready((out, emb))

    ref_out, ref_emb = reference_forward(image, label, params,
                                         s=30.0, m=0.3, ls_eps=0.0)
    assert out.shape == (B, N_CLASSES) and emb.shape == (B, EMB)
    assert jnp.allclose(emb, ref_emb, atol=1e-2, rtol=1e-2), \
        float(jnp.max(jnp.abs(emb - ref_emb)))
    assert jnp.allclose(out, ref_out, atol=5e-2, rtol=1e-2), \
        float(jnp.max(jnp.abs(out - ref_out)))

    print("KERNEL_OK")
</pallas_src>

<mosaic_0001>
module attributes {stable_mosaic.version = 11 : i64} {
  func.func @backbone_kernel(%arg0: i32, %arg1: i32, %arg2: memref<1x128x128xbf16, #tpu.memory_space<vmem>>, %arg3: memref<128x128xbf16, #tpu.memory_space<vmem>>, %arg4: memref<128x128xf32, #tpu.memory_space<vmem>>, %arg5: memref<1x128xf32, #tpu.memory_space<vmem>>, %arg6: memref<1x1x128xf32, #tpu.memory_space<vmem>>, %arg7: memref<1x128xf32, #tpu.memory_space<vmem>>) attributes {dimension_semantics = [#tpu.dimension_semantics<parallel>, #tpu.dimension_semantics<arbitrary>], iteration_bounds = array<i64: 2, 2>, scalar_prefetch = 0 : i64, scratch_operands = 1 : i64, tpu.core_type = #tpu.core_type<tc>, window_params = [{transform_indices = @transform_0, window_bounds = array<i64: 1, 128, 128>}, {pipeline_mode = #tpu.pipeline_mode<synchronous>, transform_indices = @transform_1, window_bounds = array<i64: 128, 128>}, {pipeline_mode = #tpu.pipeline_mode<synchronous>, transform_indices = @transform_2, window_bounds = array<i64: 128, 128>}, {pipeline_mode = #tpu.pipeline_mode<synchronous>, transform_indices = @transform_3, window_bounds = array<i64: 1, 128>}, {transform_indices = @transform_4, window_bounds = array<i64: 1, 1, 128>}]} {
    %c0_i32 = arith.constant 0 : i32
    %0 = arith.cmpi eq, %arg1, %c0_i32 : i32
    %1 = arith.extui %0 : i1 to i32
    %c0_i32_0 = arith.constant 0 : i32
    %2 = arith.cmpi ne, %1, %c0_i32_0 : i32
    scf.if %2 {
      %cst_12 = arith.constant 0.000000e+00 : f32
      %17 = vector.broadcast %cst_12 : f32 to vector<1x128xf32>
      %c0_13 = arith.constant 0 : index
      %c0_14 = arith.constant 0 : index
      %18 = vector.load %arg7[%c0_13, %c0_14] : memref<1x128xf32, #tpu.memory_space<vmem>>, vector<1x128xf32>
      tpu.vector_store %arg7[%c0_13, %c0_14], %17 {strides = array<i32>} : memref<1x128xf32, #tpu.memory_space<vmem>>, vector<1x128xf32>,
    } else {
    }
    %c0 = arith.constant 0 : index
    %c0_1 = arith.constant 0 : index
    %c0_2 = arith.constant 0 : index
    %3 = vector.load %arg2[%c0, %c0_1, %c0_2] : memref<1x128x128xbf16, #tpu.memory_space<vmem>>, vector<1x128x128xbf16>
    %4 = vector.shape_cast %3 : vector<1x128x128xbf16> to vector<128x128xbf16>
    %c0_3 = arith.constant 0 : index
    %c0_4 = arith.constant 0 : index
    %5 = vector.load %arg3[%c0_3, %c0_4] : memref<128x128xbf16, #tpu.memory_space<vmem>>, vector<128x128xbf16>
    %cst = arith.constant dense<0.000000e+00> : vector<128x128xf32>
    %6 = tpu.matmul %4, %5, %cst {dimension_numbers = #tpu.dot_dimension_numbers<[1], [0], [0], [1], [0, 0, 1, 1], [], []>} : vector<128x128xbf16>, vector<128x128xbf16>, vector<128x128xf32> -> vector<128x128xf32>
    %cst_5 = arith.constant 0.000000e+00 : f32
    %7 = vector.broadcast %cst_5 : f32 to vector<128x128xf32>
    %8 = arith.maximumf %6, %7 : vector<128x128xf32>
    %c0_6 = arith.constant 0 : index
    %c0_7 = arith.constant 0 : index
    %9 = vector.load %arg7[%c0_6, %c0_7] : memref<1x128xf32, #tpu.memory_space<vmem>>, vector<1x128xf32>
    %cst_8 = arith.constant dense<0.000000e+00> : vector<128xf32>
    %10 = vector.multi_reduction <add>, %8, %cst_8 [0] : vector<128x128xf32> to vector<128xf32>
    %11 = vector.shape_cast %10 : vector<128xf32> to vector<1x128xf32>
    %12 = arith.addf %9, %11 : vector<1x128xf32>
    %c0_9 = arith.constant 0 : index
    %c0_10 = arith.constant 0 : index
    %13 = vector.load %arg7[%c0_9, %c0_10] : memref<1x128xf32, #tpu.memory_space<vmem>>, vector<1x128xf32>
    tpu.vector_store %arg7[%c0_9, %c0_10], %12 {strides = array<i32>} : memref<1x128xf32, #tpu.memory_space<vmem>>, vector<1x128xf32>,
    %c1_i32 = arith.constant 1 : i32
    %14 = arith.cmpi eq, %arg1, %c1_i32 : i32
    %15 = arith.extui %14 : i1 to i32
    %c0_i32_11 = arith.constant 0 : i32
    %16 = arith.cmpi ne, %15, %c0_i32_11 : i32
    scf.if %16 {
      %c0_12 = arith.constant 0 : index
      %c0_13 = arith.constant 0 : index
      %17 = vector.load %arg7[%c0_12, %c0_13] : memref<1x128xf32, #tpu.memory_space<vmem>>, vector<1x128xf32>
      %cst_14 = arith.constant 3.906250e-03 : f32
      %18 = vector.broadcast %cst_14 : f32 to vector<1x128xf32>
      %19 = arith.mulf %17, %18 : vector<1x128xf32>
      %c0_15 = arith.constant 0 : index
      %c0_16 = arith.constant 0 : index
      %20 = vector.load %arg4[%c0_15, %c0_16] : memref<128x128xf32, #tpu.memory_space<vmem>>, vector<128x128xf32>
      %cst_17 = arith.constant dense<0.000000e+00> : vector<1x128xf32>
      %21 = tpu.matmul %19, %20, %cst_17 {dimension_numbers = #tpu.dot_dimension_numbers<[1], [0], [0], [1], [0, 0, 1, 1], [], []>} : vector<1x128xf32>, vector<128x128xf32>, vector<1x128xf32> -> vector<1x128xf32>
      %c0_18 = arith.constant 0 : index
      %c0_19 = arith.constant 0 : index
      %22 = vector.load %arg5[%c0_18, %c0_19] : memref<1x128xf32, #tpu.memory_space<vmem>>, vector<1x128xf32>
      %23 = arith.addf %21, %22 : vector<1x128xf32>
      %c0_20 = arith.constant 0 : index
      %c0_21 = arith.constant 0 : index
      %c0_22 = arith.constant 0 : index
      %24 = vector.load %arg6[%c0_20, %c0_21, %c0_22] : memref<1x1x128xf32, #tpu.memory_space<vmem>>, vector<1x1x128xf32>
      %25 = vector.shape_cast %24 : vector<1x1x128xf32> to vector<1x128xf32>
      %26 = vector.shape_cast %23 : vector<1x128xf32> to vector<1x1x128xf32>
      tpu.vector_store %arg6[%c0_20, %c0_21, %c0_22], %26 {strides = array<i32>} : memref<1x1x128xf32, #tpu.memory_space<vmem>>, vector<1x1x128xf32>,
    } else {
    }
    return
  }
  func.func @transform_0(%arg0: i32, %arg1: i32) -> (i32, i32, i32) {
    %c0_i32 = arith.constant 0 : i32
    %c0_i32_0 = arith.constant 0 : i32
    return %arg0, %arg1, %c0_i32 : i32, i32, i32
  }
  func.func @transform_1(%arg0: i32, %arg1: i32) -> (i32, i32) {
    %c0_i32 = arith.constant 0 : i32
    %c0_i32_0 = arith.constant 0 : i32
    %c0_i32_1 = arith.constant 0 : i32
    return %c0_i32, %c0_i32_0 : i32, i32
  }
  func.func @transform_2(%arg0: i32, %arg1: i32) -> (i32, i32) {
    %c0_i32 = arith.constant 0 : i32
    %c0_i32_0 = arith.constant 0 : i32
    %c0_i32_1 = arith.constant 0 : i32
    return %c0_i32, %c0_i32_0 : i32, i32
  }
  func.func @transform_3(%arg0: i32, %arg1: i32) -> (i32, i32) {
    %c0_i32 = arith.constant 0 : i32
    %c0_i32_0 = arith.constant 0 : i32
    %c0_i32_1 = arith.constant 0 : i32
    return %c0_i32, %c0_i32_0 : i32, i32
  }
  func.func @transform_4(%arg0: i32, %arg1: i32) -> (i32, i32, i32) {
    %c0_i32 = arith.constant 0 : i32
    %c0_i32_0 = arith.constant 0 : i32
    %c0_i32_1 = arith.constant 0 : i32
    return %arg0, %c0_i32, %c0_i32_0 : i32, i32, i32
  }
}

</mosaic_0001>

<bundles_post_ra>
// kernel: tpu_custom_call.1
= control target key start
LH: loop header
LB: loop body
LE: loop exit
PB: predicated region body
PF: predicated region fallthrough
CT: control target
= control target key end

     0   :  { %s1368_s0 = inlined_call_operand.hbm [shape: bf16[2,256,128], index: 0, kind: input, shape index: {}]   ;;  %s1369_s1 = inlined_call_operand.hbm [shape: bf16[128,128], index: 1, kind: input, shape index: {}]   ;;  %s1370_s2 = inlined_call_operand.hbm [shape: f32[128,128], index: 2, kind: input, shape index: {}]   ;;  %s1371_s3 = inlined_call_operand.vmem [shape: f32[1,128], index: 3, kind: input, shape index: {}]   ;;  %s1372_s4 = inlined_call_operand.hbm [shape: f32[2,1,128], index: 4, kind: output, shape index: {}]  }
   0x1   :  { %1381 = sst [smem:[#allocation19_spill]] %s1369_s1 }
   0x2   :  { %1382 = sst [smem:[#allocation20_spill]] %s1370_s2 }
   0x3   :  { %1383 = sst [smem:[#allocation21_spill]] %s1371_s3 }
   0x4   :  { %1384 = sst [smem:[#allocation22_spill]] %s1372_s4 }
   0x5   :  { %9 = vsyncpa [#allocation4], 0 }
   0x6   :  { %11 = vsyncpa [#allocation4 + $0x1], 0 }
   0x7   :  { %12 = vsyncpa [#allocation7], 0 }
   0x8   :  { %13 = vsyncpa [#allocation5], 0 }
   0x9   :  { %15 = vsyncpa [#allocation5 + $0x1], 0  ;;  %s1145_s15 = smov 0   ;;  %s1147_s16 = smov 0  }
   0xa   :  { %s1149_s17 = smov 0   ;;  %s1151_s18 = smov 0  }
   0xb   :  { %s1153_s19 = smov 0   ;;  %s1155_s20 = smov 0  }
   0xc   :  { %s1157_s21 = smov 0   ;;  %s1159_s22 = smov 0  }
   0xd   :  { %s1161_s23 = smov 0   ;;  %s1163_s24 = smov 0  }
   0xe   :  { %s1165_s25 = smov 0  }
   0xf LB: > { %1385 = sst [smem:[#allocation13_spill]] %s1071_s15  ;;  %s645_s26 = sadd.s32 4294967295, %s1111_s25   ;;  %s1111_s25 = sphi %s1165_s25, %s21_s25   ;;  %s1107_s24 = sphi %s1163_s24, %s1419_s24   ;;  %s1103_s23 = sphi %s1161_s23, %s1418_s23   ;;  %s1099_s22 = sphi %s1159_s22, %s1417_s22   ;;  %s1095_s21 = sphi %s1157_s21, %s1416_s21   ;;  %s1091_s20 = sphi %s1155_s20, %s1415_s20   ;;  %s1087_s19 = sphi %s1153_s19, %s1414_s19   ;;  %s1083_s18 = sphi %s1151_s18, %s1413_s18   ;;  %s1079_s17 = sphi %s1149_s17, %s1412_s17   ;;  %s1075_s16 = sphi %s1147_s16, %s1411_s16   ;;  %s1071_s15 = sphi %s1145_s15, %s1410_s15  }
  0x10   : > { %1386 = sst [smem:[#allocation14_spill]] %s1095_s21  ;;  %s646_s27 = sadd.s32 4294967294, %s1111_s25  }
  0x11   : > { %1387 = sst [smem:[#allocation15_spill]] %s1099_s22  ;;  %p55_p0 = scmp.ne.s32.totalorder %s1087_s19, %s1083_s18 }
  0x12   : > { %p1201_p1 = scmp.eq.s32.totalorder %s645_s26, 0  ;;  %p141_p2 = scmp.ne.s32.totalorder %s1079_s17, %s1075_s16 }
  0x13   : > { %p142_p3 = scmp.eq.s32.totalorder %s645_s26, 3  ;;  %p147_p5 = scmp.ne.s32.totalorder %s1075_s16, %s1071_s15 }
  0x14   : > { %p1209_p4 = por %p1201_p1, %p55_p0  ;;  %p148_p7 = scmp.eq.s32.totalorder %s646_s27, 3 }
  0x15   : > { %p1215_p6 = por %p142_p3, %p141_p2  ;;  %p647_p8 = scmp.ge.s32.totalorder %s1111_s25, 1 }
  0x16   : > { %p155_p9 = scmp.lt.s32.totalorder %s1111_s25, 5  ;;  %p1221_p10 = por %p148_p7, %p147_p5 }
  0x17   : > { %s1390_s30 = scalar_select %p1215_p6, 1, 0 }
  0x18   : > { %s1392_s5 = scalar_select %p1221_p10, 1, 0 }
  0x19   : > { %1391 = sst [smem:[#allocation16_spill]] %s1390_s30  ;;  %p1225_p11 = pnand %p647_p8, %p155_p9 }
  0x1a   : > { %1393 = sst [smem:[#allocation17_spill]] %s1392_s5  ;;  %s1113_s10 = smov [#allocation6]  }
  0x1b   : > { %s1395_s1 = sld [smem:[#allocation19_spill]]  ;;  %p779_p12 = pneg %p1225_p11 }
  0x1c   : > { %s168_s11 = sshll.u32 %s1113_s10, 4  ;;  %s1396_s2 = sld [smem:[#allocation20_spill]]  ;;  %s169_s11 = int_to_ptr.vmem [resolvable:$true] %s168_s11 }
  0x1d   : > { %p780_p13 = pnand %p779_p12, %p1201_p1  ;;  %s1373_s18 = smov 64  }
  0x1e   : > { %s1374_s26 = smov 4   ;;  %s1116_s27 = smov [#allocation8]  }
  0x1f   : > { %s182_s7 = sshll.u32 %s1116_s27, 4  ;;  %s1117_s8 = smov 128   ;;  %s183_s7 = int_to_ptr.vmem [resolvable:$true] %s182_s7 }
  0x20   : > { %s1118_s10 = smov 8   ;;  %s30_s12 = sadd.s32 1, %s1103_s23 }
  0x21   : > { %s166_s9 = sshll.u32 %s1395_s1, 4  ;;  %p31_p0 = scmp.ge.s32.totalorder %s30_s12, 2  ;;  %s167_s9 = int_to_ptr.hbm [resolvable:$true] %s166_s9 }
  0x22   : > { %s180_s14 = sshll.u32 %s1396_s2, 4  ;;  %s33_s13 = sadd.s32 1, %s1107_s24  ;;  %s181_s14 = int_to_ptr.hbm [resolvable:$true] %s180_s14 }
  0x23   : > { %782 = dma.hbm_to_vmem [thread:$0]  (!%p780_p13), %s167_s9, 1024, %s169_s11, [#allocation7], %s1373_s18, %s1373_s18, %s1374_s26  }
  0x24   : > { %785 = dma.hbm_to_vmem [thread:$0]  (!%p780_p13), %s181_s14, 2048, %s183_s7, [#allocation7], %s1117_s8, %s1117_s8, %s1118_s10  }
  0x25   : > { %s42_s1 = sadd.s32 1, %s1091_s20  ;;  %p49_p2 = scmp.ne.s32.totalorder %s1091_s20, %s1087_s19 }
  0x26   : > { %s1421_s12 = smov (%p31_p0, %s30_s12), 0  ;;  %s1423_s13 = smov (!%p31_p0, %s33_s13), %s1107_s24 }
  0x27   : > { %1397 = sst [smem:[#allocation18_spill]] %s1421_s12  ;;  %s38_s9 = ssub.s32 %s1103_s23, %s1421_s12 }
  0x28   : > { %p50_p3 = scmp.eq.s32.totalorder %s1111_s25, 0  ;;  %p35_p5 = scmp.ge.s32.totalorder %s1423_s13, 2 }
  0x29   : > { %s131_s11 = sadd.s32 1, %s1079_s17  ;;  %p796_p8 = scmp.lt.s32.totalorder %s1111_s25, 4 }
  0x2a   : > { %p1254_p7 = por %p50_p3, %p49_p2  ;;  %s1425_s13 = smov (%p35_p5, %s1423_s13), 0 }
  0x2b   : > { %s199_s27 = sand.u32 1, %s1091_s20   ;;  %s652_s7 = sshll.u32 %s1103_s23, 4 }
  0x2c   : > { %s37_s8 = ssub.s32 %s1107_s24, %s1425_s13  ;;  %s651_s18 = sshll.u32 %s199_s27, 6 }
  0x2d   : > { %s39_s10 = sor.u32 %s38_s9, %s37_s8  ;;  %p129_p9 = scmp.eq.s32.totalorder %s37_s8, 0 }
  0x2e   : > { %p40_p12 = scmp.eq.s32.totalorder %s39_s10, 0  ;;  %s653_s12 = sshll.u32 %s1107_s24, 5 }
  0x2f   : > { %s1266_s26 = scalar_select %p129_p9, %s1079_s17, %s131_s11  }
  0x30   : > { %s1269_s2 = scalar_select %p40_p12, %s1091_s20, %s42_s1  }
  0x31   : > { %s208_s5 = sadd.s32 %s653_s12, %s652_s7  ;;  %s203_s15 = scalar_lea.vmem [#allocation3], %s651_s18 }
  0x32   : > { %s213_s30 = sshll.u32 %s203_s15, 4  ;;  %s654_s4 = sshll.u32 %s208_s5, 2  ;;  %s214_s30 = int_to_ptr.vmem [resolvable:$true] %s213_s30 }
  0x33   : > { %s210_s21 = scalar_lea.hbm %s1368_s0, %s654_s4  ;;  %p787_p13 = pnand %p796_p8, %p1254_p7 }
  0x34   : > { %s211_s9 = sshll.u32 %s210_s21, 4  ;;  %s200_s8 = scalar_lea.sflag [#allocation4], %s199_s27  ;;  %s212_s9 = int_to_ptr.hbm [resolvable:$true] %s211_s9 }
  0x35   : > { %s1399_s11 = smov 4   ;;  %s1400_s10 = smov 64  }
  0x36   : > { %789 = dma.hbm_to_vmem [thread:$0]  (!%p787_p13), %s212_s9, 1024, %s214_s30, %s200_s8, %s1400_s10, %s1400_s10, %s1399_s11  }
  0x37   : > { %225 = sbr.rel (%p1225_p11) target bundleno = 485 (0x1e5), region = 36  ;;  %s227_s1 = sand.u32 (!%p1225_p11), 1, %s1087_s19  }
  0x38   : > { %s656_s15 = sshll.u32 (!%p1225_p11), %s227_s1, 6  ;;  %s228_s5 = scalar_lea.sflag (!%p1225_p11), [#allocation4], %s227_s1 }
  0x39   : > { %s1285_s3 = scalar_lea.vmem (!%p1225_p11), [#allocation3], %s656_s15 }
  0x3c   : > { %1058 = dma.done.wait (%p1209_p4), %s228_s5, 1024  }
  0x3d   : > { %1060 = vsyncadd (%p1209_p4), %s228_s5, 4294966272 }
  0x3e   : > { %1062 = dma.done.wait (%p1201_p1), [#allocation7], 3072  }
  0x3f   : > { %1064 = vsyncadd (%p1201_p1), [#allocation7], 4294964224  ;;  %s264_s4 = sand.u32 1, %s1075_s16   ;;  %s1401_s22 = sld [smem:[#allocation14_spill]] }
  0x40   : > { %s1298_s21 = scalar_lea.vmem [#allocation9], %s264_s4 }
  0x45   : > { %p659_p11 = scmp.ne.s32.totalorder %s1401_s22, 0 }
  0x47   : > { %270 = sbr.rel (%p659_p11) target bundleno = 78 (0x4e), region = 52 }
  0x4c   : > { %v1119_v0 = vmov 0.0  }
  0x4d   : > { %271 = vst [vmem:[#allocation2] sm:$0x1] %v1119_v0 }
  0x4e PF: > { %v742_v1 = vld [vmem:[#allocation6 + $0x38] sm:$0xff]  ;;  %v741_v2 = vld [vmem:[#allocation6 + $0x30] sm:$0xff]  ;;  %v740_v3 = vld [vmem:[#allocation6 + $0x28] sm:$0xff]  ;;  %s1402_s28 = sld [smem:[#allocation14_spill]] }
  0x4f   : > { %400 = vmatpush.bf16.msra.mxu0 %v742_v1  ;;  %743 = vmatpush.bf16.msra.mxu1 %v742_v1  ;;  %v739_v4 = vld [vmem:[#allocation6 + $0x20] sm:$0xff]  ;;  %v738_v5 = vld [vmem:[#allocation6 + $0x18] sm:$0xff]  ;;  %v737_v6 = vld [vmem:[#allocation6 + $0x10] sm:$0xff] }
  0x50   : > { %744 = vmatpush.bf16.msra.mxu2 %v742_v1  ;;  %745 = vmatpush.bf16.msra.mxu3 %v742_v1  ;;  %v736_v7 = vld [vmem:[#allocation6 + $0x8] sm:$0xff]  ;;  %v735_v8 = vld [vmem:[#allocation6] sm:$0xff]  ;;  %v729_v10 = vld [vmem:[%s1285_s3 + $0x10] sm:$0xff] }
  0x51   : > { %v727_v9 = vld [vmem:[%s1285_s3] sm:$0xff]  ;;  %v733_v12 = vld [vmem:[%s1285_s3 + $0x30] sm:$0xff]  ;;  %v728_v13 = vld [vmem:[%s1285_s3 + $0x8] sm:$0xff] }
  0x52   : > { %v731_v11 = vld [vmem:[%s1285_s3 + $0x20] sm:$0xff]  ;;  %v730_v14 = vld [vmem:[%s1285_s3 + $0x18] sm:$0xff]  ;;  %v732_v15 = vld [vmem:[%s1285_s3 + $0x28] sm:$0xff] }
  0x53   : > { %401 = vmatpush.bf16.msra.mxu0 %v741_v2  ;;  %746 = vmatpush.bf16.msra.mxu1 %v741_v2  ;;  %v734_v16 = vld [vmem:[%s1285_s3 + $0x38] sm:$0xff] }
  0x54   : > { %747 = vmatpush.bf16.msra.mxu2 %v741_v2  ;;  %748 = vmatpush.bf16.msra.mxu3 %v741_v2  ;;  %p724_p1 = scmp.ne.s32.totalorder %s1402_s28, 1 }
  0x55   : > { %s1403_s6 = sld [smem:[#allocation21_spill]] (!%p724_p1) }
  0x57   : > { %402 = vmatpush.bf16.msra.mxu0 %v740_v3  ;;  %749 = vmatpush.bf16.msra.mxu1 %v740_v3 }
  0x58   : > { %750 = vmatpush.bf16.msra.mxu2 %v740_v3  ;;  %751 = vmatpush.bf16.msra.mxu3 %v740_v3 }
  0x5b   : > { %403 = vmatpush.bf16.msra.mxu0 %v739_v4  ;;  %752 = vmatpush.bf16.msra.mxu1 %v739_v4 }
  0x5c   : > { %753 = vmatpush.bf16.msra.mxu2 %v739_v4  ;;  %754 = vmatpush.bf16.msra.mxu3 %v739_v4 }
  0x5f   : > { %404 = vmatpush.bf16.msra.mxu0 %v738_v5  ;;  %755 = vmatpush.bf16.msra.mxu1 %v738_v5 }
  0x60   : > { %756 = vmatpush.bf16.msra.mxu2 %v738_v5  ;;  %757 = vmatpush.bf16.msra.mxu3 %v738_v5  ;;  %v465_v5 = vld [vmem:[#allocation2] sm:$0x1] }
  0x63   : > { %405 = vmatpush.bf16.msra.mxu0 %v737_v6  ;;  %758 = vmatpush.bf16.msra.mxu1 %v737_v6 }
  0x64   : > { %759 = vmatpush.bf16.msra.mxu2 %v737_v6  ;;  %760 = vmatpush.bf16.msra.mxu3 %v737_v6 }
  0x67   : > { %406 = vmatpush.bf16.msra.mxu0 %v736_v7  ;;  %761 = vmatpush.bf16.msra.mxu1 %v736_v7 }
  0x68   : > { %762 = vmatpush.bf16.msra.mxu2 %v736_v7  ;;  %763 = vmatpush.bf16.msra.mxu3 %v736_v7 }
  0x6b   : > { %407 = vmatpush.bf16.msra.mxu0 %v735_v8  ;;  %764 = vmatpush.bf16.msra.mxu1 %v735_v8 }
  0x6c   : > { %765 = vmatpush.bf16.msra.mxu2 %v735_v8  ;;  %766 = vmatpush.bf16.msra.mxu3 %v735_v8 }
  0x6e   : > { %408 = vmatmul.bf16.vlgmr.msra.gmra.mxu0 %v727_v9  ;;  %418 = vmatmul.bf16.vlgmr.msra.gmra.mxu1 %v729_v10 }
  0x6f   : > { %428 = vmatmul.bf16.vlgmr.msra.gmra.mxu2 %v731_v11  ;;  %438 = vmatmul.bf16.vlgmr.msra.gmra.mxu3 %v733_v12 }
  0x7e   : > { %413 = vmatmul.bf16.gmra.mxu0 %v728_v13  ;;  %423 = vmatmul.bf16.gmra.mxu1 %v730_v14 }
  0x7f   : > { %433 = vmatmul.bf16.gmra.mxu2 %v732_v15  ;;  %443 = vmatmul.bf16.gmra.mxu3 %v734_v16 }
  0xeb   : > { %v409_v17 = vpop.f32.mrf.mxu0  ;;  %v419_v18 = vpop.f32.mrf.mxu1 }
  0xec   : > { %v449_v27 = vmax.f32 %v409_v17, 0.0  ;;  %v453_v34 = vmax.f32 %v419_v18, 0.0 }
  0xf2   : > { %v429_v20 = vpop.f32.mrf.mxu2  ;;  %v439_v23 = vpop.f32.mrf.mxu3 }
  0xf3   : > { %v411_v19 = vpop.f32.mrf.mxu0  ;;  %v421_v21 = vpop.f32.mrf.mxu1  ;;  %v457_v44 = vmax.f32 %v429_v20, 0.0  ;;  %v461_v54 = vmax.f32 %v439_v23, 0.0 }
  0xf4   : > { %v450_v25 = vmax.f32 %v411_v19, 0.0  ;;  %v454_v37 = vmax.f32 %v421_v21, 0.0 }
  0xf6   : > { %v466_v29 = vadd.f32 %v450_v25, %v449_v27 }
  0xfa   : > { %v431_v24 = vpop.f32.mrf.mxu2  ;;  %v441_v33 = vpop.f32.mrf.mxu3 }
  0xfb   : > { %v414_v22 = vpop.f32.mrf.mxu0  ;;  %v424_v26 = vpop.f32.mrf.mxu1  ;;  %v458_v47 = vmax.f32 %v431_v24, 0.0  ;;  %v462_v56 = vmax.f32 %v441_v33, 0.0 }
  0xfc   : > { %v451_v28 = vmax.f32 %v414_v22, 0.0  ;;  %v455_v40 = vmax.f32 %v424_v26, 0.0 }
  0xfe   : > { %v467_v31 = vadd.f32 %v466_v29, %v451_v28 }
 0x102   : > { %v434_v36 = vpop.f32.mrf.mxu2  ;;  %v444_v46 = vpop.f32.mrf.mxu3 }
 0x103   : > { %v416_v30 = vpop.f32.mrf.mxu0  ;;  %v426_v39 = vpop.f32.mrf.mxu1  ;;  %v459_v50 = vmax.f32 %v434_v36, 0.0  ;;  %v463_v59 = vmax.f32 %v444_v46, 0.0 }
 0x104   : > { %v452_v32 = vmax.f32 %v416_v30, 0.0  ;;  %v456_v42 = vmax.f32 %v426_v39, 0.0 }
 0x106   : > { %v468_v35 = vadd.f32 %v467_v31, %v452_v32 }
 0x108   : > { %v469_v38 = vadd.f32 %v468_v35, %v453_v34 }
 0x10a   : > { %v470_v41 = vadd.f32 %v469_v38, %v454_v37  ;;  %v436_v49 = vpop.f32.mrf.mxu2  ;;  %v446_v58 = vpop.f32.mrf.mxu3 }
 0x10b   : > { %v460_v53 = vmax.f32 %v436_v49, 0.0  ;;  %v464_v62 = vmax.f32 %v446_v58, 0.0 }
 0x10c   : > { %v471_v43 = vadd.f32 %v470_v41, %v455_v40 }
 0x10e   : > { %v472_v45 = vadd.f32 %v471_v43, %v456_v42 }
 0x110   : > { %v473_v48 = vadd.f32 %v472_v45, %v457_v44 }
 0x112   : > { %v474_v51 = vadd.f32 %v473_v48, %v458_v47 }
 0x114   : > { %v475_v52 = vadd.f32 %v474_v51, %v459_v50 }
 0x116   : > { %v476_v55 = vadd.f32 %v475_v52, %v460_v53 }
 0x118   : > { %v477_v57 = vadd.f32 %v476_v55, %v461_v54 }
 0x11a   : > { %v478_v60 = vadd.f32 %v477_v57, %v462_v56 }
 0x11c   : > { %v479_v61 = vadd.f32 %v478_v60, %v463_v59 }
 0x11e   : > { %v480_v63 = vadd.f32 %v479_v61, %v464_v62 }
 0x120   : > { %v481_v0 = vrot.slane %v480_v63, 4 }
 0x122   : > { %v482_v1 = vadd.f32 %v481_v0, %v480_v63 }
 0x124   : > { %v483_v2 = vrot.slane %v482_v1, 2 }
 0x126   : > { %v484_v3 = vadd.f32 %v483_v2, %v482_v1 }
 0x128   : > { %v485_v4 = vrot.slane %v484_v3, 1 }
 0x12a   : > { %v486_v6 = vadd.f32 %v485_v4, %v484_v3  ;;  %492 = sbr.rel (%p724_p1) target bundleno = 464 (0x1d0), region = 56 }
 0x12c   : > { %v487_v7 = vadd.f32 %v486_v6, %v465_v5 }
 0x12e   : > { %488 = vst [vmem:[#allocation2] sm:$0x1] %v487_v7 }
 0x12f   : > { %v510_v8 = vld [vmem:[#allocation8 + $0x78] sm:$0xff]  ;;  %v509_v9 = vld [vmem:[#allocation8 + $0x70] sm:$0xff]  ;;  %v508_v10 = vld [vmem:[#allocation8 + $0x68] sm:$0xff] }
 0x130   : > { %512 = vmatpush.msra.mxu0 %v510_v8  ;;  %v507_v11 = vld [vmem:[#allocation8 + $0x60] sm:$0xff]  ;;  %v506_v12 = vld [vmem:[#allocation8 + $0x58] sm:$0xff]  ;;  %v505_v13 = vld [vmem:[#allocation8 + $0x50] sm:$0xff] }
 0x131   : > { %v504_v14 = vld [vmem:[#allocation8 + $0x48] sm:$0xff]  ;;  %v503_v15 = vld [vmem:[#allocation8 + $0x40] sm:$0xff]  ;;  %v502_v16 = vld [vmem:[#allocation8 + $0x38] sm:$0xff] }
 0x132   : > { %513 = vmatpush.msra.mxu0 %v509_v9  ;;  %v501_v17 = vld [vmem:[#allocation8 + $0x30] sm:$0xff]  ;;  %v500_v18 = vld [vmem:[#allocation8 + $0x28] sm:$0xff]  ;;  %v499_v19 = vld [vmem:[#allocation8 + $0x20] sm:$0xff] }
 0x133   : > { %v498_v20 = vld [vmem:[#allocation8 + $0x18] sm:$0xff]  ;;  %v497_v21 = vld [vmem:[#allocation8 + $0x10] sm:$0xff]  ;;  %v496_v23 = vld [vmem:[#allocation8 + $0x8] sm:$0xff] }
 0x134   : > { %514 = vmatpush.msra.mxu0 %v508_v10  ;;  %v495_v24 = vld [vmem:[#allocation8] sm:$0xff]  ;;  %v511_v26 = vld [vmem:[%s1403_s6] sm:$0x1] }
 0x135   : > { %v493_v22 = vld [vmem:[#allocation2] sm:$0x1] }
 0x136   : > { %515 = vmatpush.msra.mxu0 %v507_v11  ;;  %v494_v25 = vmul.f32 0.00390625, %v493_v22 }
 0x138   : > { %516 = vmatpush.msra.mxu0 %v506_v12 }
 0x13a   : > { %517 = vmatpush.msra.mxu0 %v505_v13 }
 0x13c   : > { %518 = vmatpush.msra.mxu0 %v504_v14 }
 0x13e   : > { %519 = vmatpush.msra.mxu0 %v503_v15 }
 0x140   : > { %520 = vmatpush.msra.mxu0 %v502_v16 }
 0x142   : > { %521 = vmatpush.msra.mxu0 %v501_v17 }
 0x144   : > { %522 = vmatpush.msra.mxu0 %v500_v18 }
 0x146   : > { %523 = vmatpush.msra.mxu0 %v499_v19 }
 0x148   : > { %524 = vmatpush.msra.mxu0 %v498_v20 }
 0x14a   : > { %525 = vmatpush.msra.mxu0 %v497_v21 }
 0x14c   : > { %526 = vmatpush.msra.mxu0 %v496_v23 }
 0x14e   : > { %527 = vmatpush.msra.mxu0 %v495_v24 }
 0x14f   : > { %528 = vmatmul.f32.vlgmr.msra.gmra.mxu0 %v494_v25 }
 0x1cc   : > { %v529_v27 = vpop.f32.mrf.mxu0 }
 0x1cd   : > { %v530_v28 = vadd.f32 %v529_v27, %v511_v26 }
 0x1cf   : > { %532 = vst [vmem:[%s1298_s21] sm:$0x1] %v530_v28 }
 0x1d0 PF: > { %s1404_s18 = sld [smem:[#allocation15_spill]]  ;;  %s544_s8 = sshll.u32 %s1298_s21, 4  ;;  %s545_s8 = int_to_ptr.vmem [resolvable:$true] %s544_s8 }
 0x1d1   : > { %s1405_s27 = sld [smem:[#allocation22_spill]]  ;;  %s534_s10 = scalar_lea.sflag [#allocation5], %s264_s4 }
 0x1d7   : > { %s542_s9 = scalar_lea.hbm %s1405_s27, %s1404_s18  ;;  %s1005_s22 = scalar_lea.hbm %s1405_s27, 2 }
 0x1d8   : > { %s546_s11 = sshll.u32 %s542_s9, 4  ;;  %s547_s11 = int_to_ptr.hbm [resolvable:$true] %s546_s11 }
 0x1d9   : > { %s999_s1 = sshra.s32 %s547_s11, 4  ;;  %s1000_s1 = int_to_ptr.hbm [resolvable:$true] %s999_s1 }
 0x1da   : > { %s1001_s15 = scalar_lea.hbm %s1000_s1, 1  ;;  %p1006_p3 = scmp.lt.s32.totalorder %s1000_s1, %s1405_s27 }
 0x1db   : > { %p1002_p4 = scmp.ne.s32.totalorder %s1000_s1, %s1001_s15  ;;  %p1007_p5 = scmp.lt.s32.totalorder %s1005_s22, %s1001_s15 }
 0x1dd   : > { %p1003_p0 = pnand %p1002_p4, %p1215_p6  ;;  %p1008_p7 = por %p1007_p5, %p1006_p3 }
 0x1df   : > { %p1004_p2 = pneg %p1003_p0 }
 0x1e1   : > { %p1009_p8 = pnand %p1008_p7, %p1004_p2 }
 0x1e3   : > { %1012 = shalt.err (!%p1009_p8)
}
 0x1e4   : > { %777 = dma.vmem_to_hbm [thread:$0]  (%p1215_p6), %s545_s8, 16, %s547_s11, %s534_s10  }
 0x1e5 PF: > { %s1407_s4 = sld [smem:[#allocation13_spill]]  ;;  %p799_p9 = scmp.ge.s32.totalorder %s1111_s25, 2 }
 0x1e7   : > { %p791_p12 = pnand %p799_p9, %p1221_p10 }
 0x1e9   : > { %p792_p13 = pneg %p791_p12 }
 0x1eb   : > { %s558_s30 = sand.u32 1, %s1407_s4  }
 0x1ec   : > { %s559_s6 = scalar_lea.sflag [#allocation5], %s558_s30 }
 0x1ed   : > { %1066 = dma.done.wait (%p792_p13), %s559_s6, 16  }
 0x1ee   : > { %1068 = vsyncadd (%p792_p13), %s559_s6, 4294967280  ;;  %s21_s25 = sadd.s32 1, %s1111_s25   ;;  %s1409_s12 = sld [smem:[#allocation18_spill]] }
 0x1ef   : > { %p18_p11 = scmp.ge.s32.totalorder %s21_s25, 6   ;;  %s1410_s15 = smov %s1075_s16 }
 0x1f0   : > { %s1411_s16 = smov %s1079_s17  ;;  %s1412_s17 = smov %s1266_s26 }
 0x1f1   : > { %s1413_s18 = smov %s1087_s19  ;;  %s1414_s19 = smov %s1091_s20 }
 0x1f2   : > { %s1415_s20 = smov %s1269_s2  ;;  %s1416_s21 = smov %s1103_s23 }
 0x1f3   : > { %s1417_s22 = smov %s1107_s24  ;;  %s1419_s24 = smov %s1425_s13 }
 0x1f4   : > { %s1418_s23 = smov %s1409_s12  ;;  %20 = sbr.rel (!%p18_p11) target bundleno = 15 (0xf), region = 97 }
 0x1f9   :  { %564 = vsyncpa [#allocation4], 1 }
 0x1fa   :  { %566 = vsyncpa [#allocation4 + $0x1], 1 }
 0x1fb   :  { %567 = vsyncpa [#allocation7], 1 }
 0x1fc   :  { %568 = vsyncpa [#allocation5], 1 }
 0x1fd   :  { %570 = vsyncpa [#allocation5 + $0x1], 1 }

</bundles_post_ra>
